<compile_context>
chip_gen: v6e
topology: v6e:2x2x1
jax: 0.10.0
libtpu: 0.0.40
codegen_flags: <defaults>
</compile_context>

<pallas_src>
import jax
import jax.numpy as jnp
from jax.experimental import pallas as pl
from jax.experimental.pallas import tpu as pltpu

HIDDEN = 256
LANE = 128


def _round_up(x, m):
    return ((x + m - 1) // m) * m


def classifier_kernel(z_ref, w1_ref, b1_ref, w2_ref, b2_ref, out_ref):
    # z arrives f32 (no pre-kernel astype pass); cast to bf16 for the MXU.
    z = z_ref[...].astype(jnp.bfloat16)

    # ----- linear1: bf16 MXU operands, f32 accumulate; bias + ReLU in f32 -----
    h = jnp.dot(z, w1_ref[...], preferred_element_type=jnp.float32)
    h = jnp.maximum(h + b1_ref[...], 0.0)

    # ----- linear2: bf16 MXU operands, f32 accumulate -----
    logits = jnp.dot(h.astype(jnp.bfloat16), w2_ref[...],
                     preferred_element_type=jnp.float32)
    logits = logits + b2_ref[...]  # padded lanes carry -1e30 bias -> exp() == 0

    # ----- numerically stable softmax over the lane-dense last dim -----
    m = jnp.max(logits, axis=-1, keepdims=True)
    e = jnp.exp(logits - m)
    denom = jnp.sum(e, axis=-1, keepdims=True)
    # Exact divide so each row sums to 1.0 to f32 precision (approx reciprocal
    # was only ~1e-3 accurate and failed the normalization check).
    out_ref[...] = (e / denom).astype(out_ref.dtype)


def prepare_params(w1, b1, w2, b2):
    """One-time parameter prep (hoisted out of the forward path).

    Weights are stored (in_features, out_features) (transposed vs. nn.Linear).
    num_classes is lane-padded to a multiple of 128 with zero weight columns and
    -1e30 bias on the pad so the kernel's output stores are unmasked and padded
    lanes softmax to exactly 0.
    """
    L, H = w1.shape
    C = w2.shape[1]
    C_pad = max(LANE, _round_up(C, LANE))
    w2_p = jnp.zeros((H, C_pad), jnp.float32).at[:, :C].set(w2)
    b2_p = jnp.full((1, C_pad), -1e30, jnp.float32).at[:, :C].set(b2.reshape(1, C))
    return dict(
        w1=w1.astype(jnp.bfloat16),
        b1=b1.reshape(1, H).astype(jnp.float32),
        w2=w2_p.astype(jnp.bfloat16),
        b2=b2_p,
        latent_dim=L,
        hidden=H,
        num_classes=C,
        padded_classes=C_pad,
    )


def classifier_forward(z, params, *, block_b=2048):
    """z: (B, latent_dim) f32 -> (B, num_classes) f32 softmax probabilities."""
    B, L = z.shape
    H = params["hidden"]
    C = params["num_classes"]
    C_pad = params["padded_classes"]

    # Batch tiling: a large tile amortizes the ~0.35 us per-grid-step overhead;
    # keep >= 2 grid steps whenever the batch is splittable so v7x can shard the
    # "parallel" axis across both TensorCores, and rebalance so the last tile is
    # not mostly padding.
    TB = max(8, _round_up(min(block_b, B), 8))
    n_blocks = (B + TB - 1) // TB
    if n_blocks == 1 and B >= 16:
        n_blocks = 2
    TB = max(8, _round_up((B + n_blocks - 1) // n_blocks, 8))
    n_blocks = (B + TB - 1) // TB
    B_pad = n_blocks * TB
    if B_pad != B:
        z = jnp.pad(z, ((0, B_pad - B), (0, 0)))

    out = pl.pallas_call(
        classifier_kernel,
        out_shape=jax.ShapeDtypeStruct((B_pad, C_pad), jnp.float32),
        grid_spec=pltpu.PrefetchScalarGridSpec(
            num_scalar_prefetch=0,
            grid=(n_blocks,),
            in_specs=[
                pl.BlockSpec((TB, L), lambda i: (i, 0)),      # z tile (moves)
                pl.BlockSpec((L, H), lambda i: (0, 0)),       # w1 (VMEM-resident)
                pl.BlockSpec((1, H), lambda i: (0, 0)),       # b1 (VMEM-resident)
                pl.BlockSpec((H, C_pad), lambda i: (0, 0)),   # w2 padded (resident)
                pl.BlockSpec((1, C_pad), lambda i: (0, 0)),   # b2 padded (resident)
            ],
            out_specs=pl.BlockSpec((TB, C_pad), lambda i: (i, 0)),
        ),
        compiler_params=pltpu.CompilerParams(
            # Batch tiles are independent -> parallel (uses both TCs on v7x).
            # No vmem_limit override: footprint fits the default scoped limit on
            # all generations, and 64 MiB left no headroom on v7x.
            dimension_semantics=("parallel",),
        ),
    )(z, params["w1"], params["b1"], params["w2"], params["b2"])

    # Faithful to the nn.Module: f32 probabilities of shape (B, num_classes).
    # A consumer that can handle the padded (B_pad, C_pad) slab (or bf16 output)
    # should take `out` directly to skip this extra HBM pass.
    return out[:B, :C]


def init_params(key, latent_dim, num_classes, hidden=HIDDEN):
    """Synthetic params mimicking nn.Linear init (uniform +/- 1/sqrt(fan_in)),
    stored as (in_features, out_features)."""
    k1, k2, k3, k4 = jax.random.split(key, 4)
    bound1 = 1.0 / (latent_dim ** 0.5)
    bound2 = 1.0 / (hidden ** 0.5)
    w1 = jax.random.uniform(k1, (latent_dim, hidden), jnp.float32, -bound1, bound1)
    b1 = jax.random.uniform(k2, (1, hidden), jnp.float32, -bound1, bound1)
    w2 = jax.random.uniform(k3, (hidden, num_classes), jnp.float32, -bound2, bound2)
    b2 = jax.random.uniform(k4, (1, num_classes), jnp.float32, -bound2, bound2)
    return w1, b1, w2, b2


def reference_forward_f32(z, w1, b1, w2, b2):
    h = jnp.maximum(z @ w1 + b1, 0.0)
    return jax.nn.softmax(h @ w2 + b2, axis=-1)


def reference_forward_bf16(z, w1, b1, w2, b2):
    # Mirrors the kernel's bf16-operand / f32-accumulate arithmetic.
    h = jnp.dot(z.astype(jnp.bfloat16), w1.astype(jnp.bfloat16),
                preferred_element_type=jnp.float32)
    h = jnp.maximum(h + b1, 0.0)
    logits = jnp.dot(h.astype(jnp.bfloat16), w2.astype(jnp.bfloat16),
                     preferred_element_type=jnp.float32) + b2
    return jax.nn.softmax(logits, axis=-1)


if __name__ == "__main__":
    latent_dim = 32
    num_classes = 10
    batch = 8

    key = jax.random.PRNGKey(0)
    kz, kp = jax.random.split(key)
    z = jax.random.normal(kz, (batch, latent_dim), jnp.float32)
    w1, b1, w2, b2 = init_params(kp, latent_dim, num_classes)
    params = prepare_params(w1, b1, w2, b2)   # one-time weight prep (hoisted)

    out = jax.block_until_ready(classifier_forward(z, params))
    assert out.shape == (batch, num_classes)

    ref_bf16 = reference_forward_bf16(z, w1, b1, w2, b2)
    ref_f32 = reference_forward_f32(z, w1, b1, w2, b2)
    assert jnp.allclose(out, ref_bf16, atol=1e-3, rtol=1e-3)
    assert jnp.allclose(out, ref_f32, atol=2e-2, rtol=2e-2)
    assert jnp.allclose(jnp.sum(out, axis=-1), 1.0, atol=1e-3)

    # Exercise the multi-tile + ragged-batch path (>=2 grid steps -> both v7x TCs).
    z_big = jax.random.normal(kz, (300, latent_dim), jnp.float32)
    out_big = jax.block_until_ready(classifier_forward(z_big, params))
    ref_big = reference_forward_bf16(z_big, w1, b1, w2, b2)
    assert out_big.shape == (300, num_classes)
    assert jnp.allclose(out_big, ref_big, atol=1e-3, rtol=1e-3)
    assert jnp.allclose(jnp.sum(out_big, axis=-1), 1.0, atol=1e-3)

    print("KERNEL_OK")
</pallas_src>

<mosaic_0001>
module attributes {stable_mosaic.version = 11 : i64} {
  func.func @classifier_kernel(%arg0: i32, %arg1: memref<8x32xf32, #tpu.memory_space<vmem>>, %arg2: memref<32x256xbf16, #tpu.memory_space<vmem>>, %arg3: memref<1x256xf32, #tpu.memory_space<vmem>>, %arg4: memref<256x128xbf16, #tpu.memory_space<vmem>>, %arg5: memref<1x128xf32, #tpu.memory_space<vmem>>, %arg6: memref<8x128xf32, #tpu.memory_space<vmem>>) attributes {dimension_semantics = [#tpu.dimension_semantics<parallel>], iteration_bounds = array<i64: 1>, scalar_prefetch = 0 : i64, scratch_operands = 0 : i64, tpu.core_type = #tpu.core_type<tc>, window_params = [{transform_indices = @transform_0, window_bounds = array<i64: 8, 32>}, {pipeline_mode = #tpu.pipeline_mode<synchronous>, transform_indices = @transform_1, window_bounds = array<i64: 32, 256>}, {pipeline_mode = #tpu.pipeline_mode<synchronous>, transform_indices = @transform_2, window_bounds = array<i64: 1, 256>}, {pipeline_mode = #tpu.pipeline_mode<synchronous>, transform_indices = @transform_3, window_bounds = array<i64: 256, 128>}, {pipeline_mode = #tpu.pipeline_mode<synchronous>, transform_indices = @transform_4, window_bounds = array<i64: 1, 128>}, {transform_indices = @transform_5, window_bounds = array<i64: 8, 128>}]} {
    %c0 = arith.constant 0 : index
    %c0_0 = arith.constant 0 : index
    %0 = vector.load %arg1[%c0, %c0_0] : memref<8x32xf32, #tpu.memory_space<vmem>>, vector<8x32xf32>
    %1 = arith.truncf %0 : vector<8x32xf32> to vector<8x32xbf16>
    %c0_1 = arith.constant 0 : index
    %c0_2 = arith.constant 0 : index
    %2 = vector.load %arg2[%c0_1, %c0_2] : memref<32x256xbf16, #tpu.memory_space<vmem>>, vector<32x256xbf16>
    %cst = arith.constant dense<0.000000e+00> : vector<8x256xf32>
    %3 = tpu.matmul %1, %2, %cst {dimension_numbers = #tpu.dot_dimension_numbers<[1], [0], [0], [1], [0, 0, 1, 1], [], []>} : vector<8x32xbf16>, vector<32x256xbf16>, vector<8x256xf32> -> vector<8x256xf32>
    %c0_3 = arith.constant 0 : index
    %c0_4 = arith.constant 0 : index
    %4 = vector.load %arg3[%c0_3, %c0_4] : memref<1x256xf32, #tpu.memory_space<vmem>>, vector<1x256xf32>
    %5 = vector.broadcast %4 : vector<1x256xf32> to vector<8x256xf32>
    %6 = arith.addf %3, %5 : vector<8x256xf32>
    %cst_5 = arith.constant 0.000000e+00 : f32
    %7 = vector.broadcast %cst_5 : f32 to vector<8x256xf32>
    %8 = arith.maximumf %6, %7 : vector<8x256xf32>
    %9 = arith.truncf %8 : vector<8x256xf32> to vector<8x256xbf16>
    %c0_6 = arith.constant 0 : index
    %c0_7 = arith.constant 0 : index
    %10 = vector.load %arg4[%c0_6, %c0_7] : memref<256x128xbf16, #tpu.memory_space<vmem>>, vector<256x128xbf16>
    %cst_8 = arith.constant dense<0.000000e+00> : vector<8x128xf32>
    %11 = tpu.matmul %9, %10, %cst_8 {dimension_numbers = #tpu.dot_dimension_numbers<[1], [0], [0], [1], [0, 0, 1, 1], [], []>} : vector<8x256xbf16>, vector<256x128xbf16>, vector<8x128xf32> -> vector<8x128xf32>
    %c0_9 = arith.constant 0 : index
    %c0_10 = arith.constant 0 : index
    %12 = vector.load %arg5[%c0_9, %c0_10] : memref<1x128xf32, #tpu.memory_space<vmem>>, vector<1x128xf32>
    %13 = vector.broadcast %12 : vector<1x128xf32> to vector<8x128xf32>
    %14 = arith.addf %11, %13 : vector<8x128xf32>
    %cst_11 = arith.constant dense<0xFF800000> : vector<8xf32>
    %15 = vector.multi_reduction <maximumf>, %14, %cst_11 [1] : vector<8x128xf32> to vector<8xf32>
    %16 = vector.shape_cast %15 : vector<8xf32> to vector<8x1xf32>
    %17 = vector.broadcast %16 : vector<8x1xf32> to vector<8x128xf32>
    %18 = arith.subf %14, %17 : vector<8x128xf32>
    %19 = math.exp %18 : vector<8x128xf32>
    %cst_12 = arith.constant dense<0.000000e+00> : vector<8xf32>
    %20 = vector.multi_reduction <add>, %19, %cst_12 [1] : vector<8x128xf32> to vector<8xf32>
    %21 = vector.shape_cast %20 : vector<8xf32> to vector<8x1xf32>
    %22 = vector.broadcast %21 : vector<8x1xf32> to vector<8x128xf32>
    %23 = arith.divf %19, %22 : vector<8x128xf32>
    %c0_13 = arith.constant 0 : index
    %c0_14 = arith.constant 0 : index
    %24 = vector.load %arg6[%c0_13, %c0_14] : memref<8x128xf32, #tpu.memory_space<vmem>>, vector<8x128xf32>
    tpu.vector_store %arg6[%c0_13, %c0_14], %23 {strides = array<i32>} : memref<8x128xf32, #tpu.memory_space<vmem>>, vector<8x128xf32>,
    return
  }
  func.func @transform_0(%arg0: i32) -> (i32, i32) {
    %c0_i32 = arith.constant 0 : i32
    %c0_i32_0 = arith.constant 0 : i32
    return %arg0, %c0_i32 : i32, i32
  }
  func.func @transform_1(%arg0: i32) -> (i32, i32) {
    %c0_i32 = arith.constant 0 : i32
    %c0_i32_0 = arith.constant 0 : i32
    %c0_i32_1 = arith.constant 0 : i32
    return %c0_i32, %c0_i32_0 : i32, i32
  }
  func.func @transform_2(%arg0: i32) -> (i32, i32) {
    %c0_i32 = arith.constant 0 : i32
    %c0_i32_0 = arith.constant 0 : i32
    %c0_i32_1 = arith.constant 0 : i32
    return %c0_i32, %c0_i32_0 : i32, i32
  }
  func.func @transform_3(%arg0: i32) -> (i32, i32) {
    %c0_i32 = arith.constant 0 : i32
    %c0_i32_0 = arith.constant 0 : i32
    %c0_i32_1 = arith.constant 0 : i32
    return %c0_i32, %c0_i32_0 : i32, i32
  }
  func.func @transform_4(%arg0: i32) -> (i32, i32) {
    %c0_i32 = arith.constant 0 : i32
    %c0_i32_0 = arith.constant 0 : i32
    %c0_i32_1 = arith.constant 0 : i32
    return %c0_i32, %c0_i32_0 : i32, i32
  }
  func.func @transform_5(%arg0: i32) -> (i32, i32) {
    %c0_i32 = arith.constant 0 : i32
    %c0_i32_0 = arith.constant 0 : i32
    return %arg0, %c0_i32 : i32, i32
  }
}

</mosaic_0001>

<bundles_post_ra>
// kernel: tpu_custom_call.1
= control target key start
LH: loop header
LB: loop body
LE: loop exit
PB: predicated region body
PF: predicated region fallthrough
CT: control target
= control target key end

     0   :  { %10 = vsyncpa [#allocation3], 0  ;;  %s571_s0 = inlined_call_operand.hbm [shape: f32[8,32], index: 0, kind: input, shape index: {}]   ;;  %s572_s1 = inlined_call_operand.hbm [shape: bf16[32,256], index: 1, kind: input, shape index: {}]   ;;  %s573_s2 = inlined_call_operand.vmem [shape: f32[1,256], index: 2, kind: input, shape index: {}]   ;;  %s574_s3 = inlined_call_operand.hbm [shape: bf16[256,128], index: 3, kind: input, shape index: {}]   ;;  %s575_s4 = inlined_call_operand.vmem [shape: f32[1,128], index: 4, kind: input, shape index: {}]   ;;  %s576_s5 = inlined_call_operand.hbm [shape: f32[8,128], index: 5, kind: output, shape index: {}]  }
   0x1   :  { %11 = vsyncpa [#allocation6], 0 }
   0x2   :  { %12 = vsyncpa [#allocation4], 0  ;;  %s514_s18 = smov [#allocation5]  }
   0x3   :  { %s28_s19 = sshll.u32 %s514_s18, 4  ;;  %s29_s19 = int_to_ptr.vmem [resolvable:$true] %s28_s19 }
   0x4   :  { %s436_s20 = scalar_lea.vmem %s29_s19, 512  ;;  %p441_p1 = scmp.lt.s32.totalorder %s29_s19, %s29_s19 }
   0x5   :  { %p437_p0 = scmp.ne.s32.totalorder %s29_s19, %s436_s20  ;;  %p442_p2 = scmp.lt.s32.totalorder %s436_s20, %s436_s20 }
   0x7   :  { %p443_p3 = por %p442_p2, %p441_p1 }
   0x9   :  { %p444_p4 = pnand %p443_p3, %p437_p0 }
   0xb   :  { %447 = shalt.err (!%p444_p4)
}
   0xc   :  { %s515_s21 = smov 128   ;;  %s516_s22 = smov 8  }
   0xd   :  { %34 = dma.hbm_to_vmem [thread:$0]  %s572_s1, 512, %s29_s19, [#allocation6], %s515_s21, %s515_s21, %s516_s22  }
   0xe   :  { %s517_s25 = smov [#allocation2]   ;;  %s518_s27 = smov [#allocation7]  }
   0xf   :  { %s19_s26 = sshll.u32 %s517_s25, 4  ;;  %s42_s28 = sshll.u32 %s518_s27, 4  ;;  %s20_s26 = int_to_ptr.vmem [resolvable:$true] %s19_s26  ;;  %s43_s28 = int_to_ptr.vmem [resolvable:$true] %s42_s28 }
  0x10   :  { %s456_s29 = scalar_lea.vmem %s20_s26, 128  ;;  %p461_p6 = scmp.lt.s32.totalorder %s20_s26, %s20_s26 }
  0x11   :  { %p457_p5 = scmp.ne.s32.totalorder %s20_s26, %s456_s29  ;;  %p462_p7 = scmp.lt.s32.totalorder %s456_s29, %s456_s29 }
  0x13   :  { %p463_p8 = por %p462_p7, %p461_p6 }
  0x15   :  { %p464_p9 = pnand %p463_p8, %p457_p5 }
  0x17   :  { %467 = shalt.err (!%p464_p9)
}
  0x18   :  { %22 = dma.hbm_to_vmem [thread:$0]  %s571_s0, 128, %s20_s26, [#allocation3]  }
  0x19   :  { %s476_s7 = scalar_lea.vmem %s43_s28, 2048  ;;  %p481_p11 = scmp.lt.s32.totalorder %s43_s28, %s43_s28 }
  0x1a   :  { %p477_p10 = scmp.ne.s32.totalorder %s43_s28, %s476_s7  ;;  %p482_p12 = scmp.lt.s32.totalorder %s476_s7, %s476_s7 }
  0x1c   :  { %p483_p13 = por %p482_p12, %p481_p11 }
  0x1e   :  { %p484_p0 = pnand %p483_p13, %p477_p10 }
  0x20   :  { %487 = shalt.err (!%p484_p0)
}
  0x21   :  { %s519_s1 = smov 64   ;;  %s520_s8 = smov 4  }
  0x22   :  { %48 = dma.hbm_to_vmem [thread:$0]  %s574_s3, 2048, %s43_s28, [#allocation6], %s519_s1, %s519_s1, %s520_s8  }
  0x23   :  { %508 = dma.done.wait [#allocation3], 128  }
  0x24   :  { %509 = vsyncadd [#allocation3], 4294967168 }
  0x25   :  { %510 = dma.done.wait [#allocation6], 2560  }
  0x26   :  { %511 = vsyncadd [#allocation6], 4294964736  ;;  %v521_v0 = vmov 0   ;;  %v402_v1 = vld [vmem:[#allocation5 + $0x14] ss:$8 sps:$4 sm:$0xff]   ;;  %vm99_vm0 = vcmask 261120   ;;  %v69_v23 = vlaneseq }
  0x27   :  { %135 = vmatprep.mubr.bf16.mxu0 %v521_v0  ;;  %v404_v2 = vld [vmem:[#allocation5 + $0x10] ss:$8 sps:$4 sm:$0xff]   ;;  %115 = vmatprep.subr.bf16.mxu0 %v402_v1  ;;  %v405_v3 = vld [vmem:[#allocation5 + $0x4] ss:$8 sps:$4 sm:$0xff]   ;;  %v407_v4 = vld [vmem:[#allocation5] ss:$8 sps:$4 sm:$0xff]  }
  0x28   :  { %v61_v5 = vld [vmem:[#allocation2] sm:$0xff]  ;;  %116 = vmatpush1.bf16.msra.mxu0 %v404_v2  ;;  %v410_v8 = vld [vmem:[#allocation7 + $0x70] sm:$0xff]   ;;  %v412_v11 = vld [vmem:[#allocation7 + $0x68] sm:$0xff]   ;;  %v70_v24 = vshrl.u32 %v69_v23, 7 }
  0x29   :  { %v408_v6 = vld [vmem:[#allocation7 + $0x78] sm:$0xff]   ;;  %117 = vmatprep.subr.bf16.mxu0 %v405_v3  ;;  %v62_v9 = vpack.c.bf16 %v61_v5, %v61_v5  ;;  %v411_v10 = vld [vmem:[#allocation7 + $0x30] sm:$0xff]   ;;  %v413_v12 = vld [vmem:[#allocation7 + $0x28] sm:$0xff]  }
  0x2a   :  { %v409_v7 = vld [vmem:[#allocation7 + $0x38] sm:$0xff]   ;;  %371 = vmatprep.subr.bf16.mxu1 %v408_v6  ;;  %v414_v13 = vld [vmem:[#allocation7 + $0x60] sm:$0xff]   ;;  %v418_v17 = vld [vmem:[#allocation7 + $0x50] sm:$0xff]   ;;  %v71_v25 = vsub.s32 0, %v70_v24  ;;  %v75_v27 = vsub.s32 1, %v70_v24 }
  0x2b   :  { %372 = vmatpush3.bf16.msra.mxu1 %v409_v7  ;;  %v415_v14 = vld [vmem:[#allocation7 + $0x20] sm:$0xff]   ;;  %v416_v15 = vld [vmem:[#allocation7 + $0x58] sm:$0xff]   ;;  %v419_v18 = vld [vmem:[#allocation7 + $0x10] sm:$0xff]  }
  0x2c   :  { %118 = vmatpush1.bf16.msra.mxu0 %v407_v4  ;;  %373 = vmatprep.subr.bf16.mxu1 %v410_v8  ;;  %v417_v16 = vld [vmem:[#allocation7 + $0x18] sm:$0xff]   ;;  %v420_v19 = vld [vmem:[#allocation7 + $0x48] sm:$0xff]   ;;  %v422_v21 = vld [vmem:[#allocation7 + $0x40] sm:$0xff]  }
  0x2d   :  { %v421_v20 = vld [vmem:[#allocation7 + $0x8] sm:$0xff]   ;;  %v423_v22 = vld [vmem:[#allocation7] sm:$0xff]   ;;  %v67_v26 = vld [vmem:[%s573_s2] sm:$0x3]  ;;  %s522_s2 = smov [#allocation8]  }
  0x2e   :  { %v72_v28 = vrot.slane %v67_v26, %v71_v25  ;;  %v76_v29 = vrot.slane %v67_v26, %v75_v27  ;;  %v354_v42 = vld [vmem:[%s575_s4] ss:$0 sm:$0xff]  ;;  %s339_s13 = sshll.u32 %s522_s2, 4  ;;  %s340_s13 = int_to_ptr.vmem [resolvable:$true] %s339_s13 }
  0x2f   :  { %353 = vmatmul.mubr.msk.bf16.vlgmr.msra.gmra.mxu0 %vm99_vm0, %v62_v9  ;;  %374 = vmatpush3.bf16.msra.mxu1 %v411_v10  ;;  %s488_s4 = scalar_lea.vmem %s340_s13, 128  ;;  %p493_p2 = scmp.lt.s32.totalorder %s340_s13, %s340_s13 }
  0x30   :  { %375 = vmatprep.subr.bf16.mxu1 %v412_v11  ;;  %p489_p1 = scmp.ne.s32.totalorder %s340_s13, %s488_s4  ;;  %p494_p3 = scmp.lt.s32.totalorder %s488_s4, %s488_s4 }
  0x32   :  { %p495_p4 = por %p494_p3, %p493_p2 }
  0x33   :  { %376 = vmatpush3.bf16.msra.mxu1 %v413_v12 }
  0x34   :  { %377 = vmatprep.subr.bf16.mxu1 %v414_v13  ;;  %p496_p5 = pnand %p495_p4, %p489_p1 }
  0x37   :  { %378 = vmatpush3.bf16.msra.mxu1 %v415_v14 }
  0x38   :  { %379 = vmatprep.subr.bf16.mxu1 %v416_v15 }
  0x3b   :  { %380 = vmatpush3.bf16.msra.mxu1 %v417_v16 }
  0x3c   :  { %381 = vmatprep.subr.bf16.mxu1 %v418_v17 }
  0x3f   :  { %382 = vmatpush3.bf16.msra.mxu1 %v419_v18 }
  0x40   :  { %383 = vmatprep.subr.bf16.mxu1 %v420_v19 }
  0x43   :  { %384 = vmatpush3.bf16.msra.mxu1 %v421_v20 }
  0x44   :  { %385 = vmatprep.subr.bf16.mxu1 %v422_v21 }
  0x47   :  { %386 = vmatpush3.bf16.msra.mxu1 %v423_v22 }
  0xef   :  { %v137_v30 = vpop.f32.mrf.mxu0 }
  0xf0   :  { %v138_v31 = vadd.f32 %v137_v30, %v72_v28 }
  0xf1   :  { %v139_v32 = vpop.f32.mrf.mxu0 }
  0xf2   :  { %v140_v33 = vadd.f32 %v139_v32, %v76_v29  ;;  %v144_v34 = vmax.f32 %v138_v31, 0.0 }
  0xf3   :  { %v141_v35 = vpop.f32.mrf.mxu0 }
  0xf4   :  { %v145_v36 = vmax.f32 %v140_v33, 0.0  ;;  %v146_v39 = vpack.c.bf16 %v144_v34, %v144_v34 }
  0xf5   :  { %v142_v37 = vpop.f32.mrf.mxu0 }
  0xf6   :  { %v147_v38 = vpack.c.bf16 %v145_v36, %v145_v36 }
  0xf8   :  { %315 = vmatprep.mubr.bf16.mxu1 %v147_v38 }
  0xf9   :  { %316 = vmatmul.mubr.bf16.vlgmr.msra.gmra.mxu1 %v146_v39 }
 0x1b9   :  { %v387_v40 = vpop.f32.mrf.mxu1 }
 0x1bb   :  { %v388_v41 = vpop.f32.mrf.mxu1 }
 0x1bc   :  { %v389_v43 = vadd.f32 %v388_v41, %v387_v40 }
 0x1bd   :  { %v390_v44 = vpop.f32.mrf.mxu1 }
 0x1be   :  { %v318_v45 = vadd.f32 %v389_v43, %v354_v42 }
 0x1bf   :  { %v391_v46 = vpop.f32.mrf.mxu1 }
 0x1c0   :  { %323 = vmax.xlane.f32.xlu0 %v318_v45 }
 0x249   :  { %v324_v47 = vpop.xlane.xlu0 %323 }
 0x24a   :  { %v325_v48 = vsub.f32 %v318_v45, %v324_v47 }
 0x24c   :  { %v326_v49 = vmul.f32 1.442695, %v325_v48 }
 0x24e   :  { %424 = vpow2.f32 %v326_v49 }
 0x25b   :  { %v425_v50 = vpop.eup %424 }
 0x25c   :  { %328 = vadd.xlane.f32.xlu0 %v425_v50 }
 0x2e5   :  { %v329_v51 = vpop.xlane.xlu0 %328 }
 0x2e6   :  { %426 = vrcp.f32 %v329_v51 }
 0x2f3   :  { %v427_v52 = vpop.eup %426 }
 0x2f4   :  { %v331_v53 = vmul.f32 %v427_v52, %v425_v50 }
 0x2f6   :  { %332 = vst [vmem:[#allocation8] sm:$0xff] %v331_v53 }
 0x2f7   :  { %499 = shalt.err (!%p496_p5)
}
 0x2f8   :  { %342 = dma.vmem_to_hbm [thread:$0]  %s340_s13, 128, %s576_s5, [#allocation4]  }
 0x2f9   :  { %512 = dma.done.wait [#allocation4], 128  }
 0x2fa   :  { %513 = vsyncadd [#allocation4], 4294967168 }
 0x2fb   :  { %346 = vsyncpa [#allocation3], 1 }
 0x2fc   :  { %347 = vsyncpa [#allocation6], 1 }
 0x2fd   :  { %348 = vsyncpa [#allocation4], 1 }

</bundles_post_ra>
